<compile_context>
chip_gen: v7x
topology: tpu7x:2x2x1
jax: 0.10.0
libtpu: 0.0.40
codegen_flags: <defaults>
</compile_context>

<pallas_src>
import jax
import jax.numpy as jnp
from jax import lax
from jax.experimental import pallas as pl
from jax.experimental.pallas import tpu as pltpu


# ---------------------------------------------------------------------------
# Kernel 1: fused g/phi 1x1-conv projections as a single matmul per tile.
#   w (2Ci, C) @ x (C, TQ) -> (2Ci, TQ); rows = [g ; phi].  bf16 output.
# ---------------------------------------------------------------------------
def _gphi_kernel(w_ref, b_ref, x_ref, gp_ref):
    proj = jnp.dot(w_ref[...], x_ref[0].astype(jnp.bfloat16),
                   preferred_element_type=jnp.float32) + b_ref[...]   # (2Ci, TQ)
    gp_ref[0] = proj.astype(jnp.bfloat16)


# ---------------------------------------------------------------------------
# Kernel 2: theta projection, attention (softmax(theta^T phi) @ g), W 1x1 conv
# with folded eval-mode BatchNorm, and the residual add -- per (batch, q-tile).
#   x : (C, TQ)   pooled g : (Ci, Ns)   pooled phi : (Ci, Ns)
# ---------------------------------------------------------------------------
def _attn_kernel(x_ref, g_ref, phi_ref, wth_ref, bth_ref, ww_ref, wb_ref,
                 z_ref):
    xb = x_ref[0]                                                    # (C, TQ) f32
    xb_bf = xb.astype(jnp.bfloat16)

    # theta from the x tile already in VMEM (no HBM round trip for theta).
    theta = (jnp.dot(wth_ref[...], xb_bf,
                     preferred_element_type=jnp.float32)
             + bth_ref[...])                                         # (Ci, TQ)

    # scores f[n, q] = sum_c phi[c, n] * theta[c, q]  (contract over Ci;
    # no transpose of phi needed -- MXU handles the transposed-LHS layout).
    f = lax.dot_general(phi_ref[0], theta.astype(jnp.bfloat16),
                        dimension_numbers=(((0,), (0,)), ((), ())),
                        preferred_element_type=jnp.float32)          # (Ns, TQ)

    # softmax over the key axis (axis 0); statistics are (1, TQ) row vectors.
    # TODO(synk): switch to a flash-style key-axis loop (running max/sum) once
    # Ns*TQ*4 bytes no longer fits comfortably in VMEM.
    m = jnp.max(f, axis=0, keepdims=True)
    e = jnp.exp(f - m)
    denom = jnp.sum(e, axis=0, keepdims=True)                        # (1, TQ)

    # unnormalized y = g @ e; fold the softmax denominator in afterwards.
    y = jnp.dot(g_ref[0], e.astype(jnp.bfloat16),
                preferred_element_type=jnp.float32)                  # (Ci, TQ)
    y = y * pl.reciprocal(denom, approx=False)

    # W 1x1 conv (Ci -> C) with BatchNorm folded into weight/bias + residual.
    wy = (jnp.dot(ww_ref[...], y.astype(jnp.bfloat16),
                  preferred_element_type=jnp.float32) + wb_ref[...]) # (C, TQ)
    z_ref[0] = wy + xb


def _pick_tile(n):
    for t in (1024, 512, 256, 128):
        if n % t == 0 and n // t >= 2:
            return t
    for t in (1024, 512, 256, 128):
        if n % t == 0:
            return t
    return n


# ---------------------------------------------------------------------------
# Wrapper
# ---------------------------------------------------------------------------
def nonlocal_block_embedded_gaussian(x_nchw, params):
    B, C, H, W = x_nchw.shape
    Ci = params["wg"].shape[0]
    assert H % 2 == 0 and W % 2 == 0, "sub_sample 2x2 pool needs even H, W"
    N = H * W
    Hs, Ws = H // 2, W // 2
    Ns = Hs * Ws
    # TODO(synk): pad N to a multiple of 128 (and mask the padded keys in the
    # softmax) to support feature maps whose flattened size is not lane-aligned.
    assert N % 128 == 0, "flattened spatial size must be a multiple of 128"
    TQ = _pick_tile(N)
    nq = N // TQ

    # channels-major, spatially flattened (B, C, N): identical memory layout to
    # the torch NCHW input, so this reshape is free (no transpose).
    x_bcn = x_nchw.reshape(B, C, N)

    # VMEM budget per chip generation (≈3/4 of capacity, capped at 96 MiB):
    # respects v7x's 64 MiB while exploiting v5e/v6e's 128 MiB.
    try:
        vmem_cap = pltpu.get_tpu_info().vmem_capacity_bytes
    except Exception:
        vmem_cap = 64 * 1024 * 1024
    vmem_limit = min(int(vmem_cap * 3 // 4), 96 * 1024 * 1024)

    cparams = pltpu.CompilerParams(
        dimension_semantics=("parallel", "parallel"),
        vmem_limit_bytes=vmem_limit,
    )

    # Concatenated [g ; phi] projection weights (bf16 MXU operands).
    w_gphi = jnp.concatenate([params["wg"], params["wphi"]],
                             axis=0).astype(jnp.bfloat16)            # (2Ci, C)
    b_gphi = jnp.concatenate([params["bg"], params["bphi"]],
                             axis=0)[:, None]                        # (2Ci, 1)

    gphi = pl.pallas_call(
        _gphi_kernel,
        out_shape=jax.ShapeDtypeStruct((B, 2 * Ci, N), jnp.bfloat16),
        grid=(B, nq),
        in_specs=[
            pl.BlockSpec((2 * Ci, C), lambda b, q: (0, 0)),
            pl.BlockSpec((2 * Ci, 1), lambda b, q: (0, 0)),
            pl.BlockSpec((1, C, TQ), lambda b, q: (b, 0, q)),
        ],
        out_specs=pl.BlockSpec((1, 2 * Ci, TQ), lambda b, q: (b, 0, q)),
        compiler_params=cparams,
    )(w_gphi, b_gphi, x_bcn)

    # sub_sample: 2x2 max pool of g(x)/phi(x)  (B, 2Ci, N) -> (B, 2Ci, Ns),
    # now on a bf16 intermediate (half the old f32 traffic).
    # TODO(synk): fuse this windowed max-reduce into _gphi_kernel (needs
    # lane-strided in-kernel compaction); kept as a small XLA op for now.
    gphi_p = jnp.max(gphi.reshape(B, 2 * Ci, Hs, 2, Ws, 2),
                     axis=(3, 5)).reshape(B, 2 * Ci, Ns)
    g_p = gphi_p[:, :Ci, :]                                  # (B, Ci, Ns) bf16
    phi_p = gphi_p[:, Ci:, :]                                # (B, Ci, Ns) bf16 (no transpose)

    # Fold eval-mode BatchNorm into the W projection weight / bias.
    # TODO(synk): training-mode BatchNorm (batch statistics) not implemented.
    scale = params["gamma"] / jnp.sqrt(params["running_var"] + 1e-5)
    shift = params["beta"] - params["running_mean"] * scale
    ww_f = (scale[:, None] * params["ww"]).astype(jnp.bfloat16)      # (C, Ci)
    wb_f = (params["wb"] * scale + shift)[:, None]                   # (C, 1) f32

    w_th = params["wth"].astype(jnp.bfloat16)                        # (Ci, C)
    b_th = params["bth"][:, None]                                    # (Ci, 1) f32

    z_bcn = pl.pallas_call(
        _attn_kernel,
        out_shape=jax.ShapeDtypeStruct((B, C, N), jnp.float32),
        grid=(B, nq),
        in_specs=[
            pl.BlockSpec((1, C, TQ), lambda b, q: (b, 0, q)),    # x (theta + residual)
            pl.BlockSpec((1, Ci, Ns), lambda b, q: (b, 0, 0)),   # pooled g
            pl.BlockSpec((1, Ci, Ns), lambda b, q: (b, 0, 0)),   # pooled phi
            pl.BlockSpec((Ci, C), lambda b, q: (0, 0)),          # theta weight
            pl.BlockSpec((Ci, 1), lambda b, q: (0, 0)),          # theta bias
            pl.BlockSpec((C, Ci), lambda b, q: (0, 0)),          # W weight (BN folded)
            pl.BlockSpec((C, 1), lambda b, q: (0, 0)),           # W bias (BN folded)
        ],
        out_specs=pl.BlockSpec((1, C, TQ), lambda b, q: (b, 0, q)),
        input_output_aliases={0: 0},   # write z in place of the x buffer
        compiler_params=cparams,
    )(x_bcn, g_p, phi_p, w_th, b_th, ww_f, wb_f)

    return z_bcn.reshape(B, C, H, W)


# ---------------------------------------------------------------------------
# Pure-JAX reference (mirrors the PyTorch forward) for correctness checking.
# ---------------------------------------------------------------------------
def reference_forward(x, params):
    B, C, H, W = x.shape

    def conv1x1(t, w, b):  # w: (Cout, Cin)
        return jnp.einsum("oc,bchw->bohw", w, t) + b[None, :, None, None]

    def pool(t):
        Bc, Cc, Hh, Ww = t.shape
        return jnp.max(t.reshape(Bc, Cc, Hh // 2, 2, Ww // 2, 2), axis=(3, 5))

    g = pool(conv1x1(x, params["wg"], params["bg"]))
    phi = pool(conv1x1(x, params["wphi"], params["bphi"]))
    theta = conv1x1(x, params["wth"], params["bth"])
    Ci = g.shape[1]

    g_x = g.reshape(B, Ci, -1).transpose(0, 2, 1)
    phi_x = phi.reshape(B, Ci, -1)
    theta_x = theta.reshape(B, Ci, -1).transpose(0, 2, 1)

    f = jnp.einsum("bnc,bcm->bnm", theta_x, phi_x)
    f_div_C = jax.nn.softmax(f, axis=-1)
    y = jnp.einsum("bnm,bmc->bnc", f_div_C, g_x)
    y = y.transpose(0, 2, 1).reshape(B, Ci, H, W)

    wy = conv1x1(y, params["ww"], params["wb"])
    scale = params["gamma"] / jnp.sqrt(params["running_var"] + 1e-5)
    shift = params["beta"] - params["running_mean"] * scale
    wy = wy * scale[None, :, None, None] + shift[None, :, None, None]
    return wy + x


if __name__ == "__main__":
    B, C, H, W = 2, 4, 16, 16     # x: (b, c, h, w)
    Ci = 2                        # inter_channels = in_channels // 2

    keys = jax.random.split(jax.random.PRNGKey(0), 12)
    x = jax.random.normal(keys[0], (B, C, H, W), jnp.float32)

    params = {
        # g / theta / phi 1x1 conv weights stored conv-style as (Cout, Cin)
        "wg":   0.2 * jax.random.normal(keys[1], (Ci, C), jnp.float32),
        "bg":   0.2 * jax.random.normal(keys[2], (Ci,), jnp.float32),
        "wth":  0.2 * jax.random.normal(keys[3], (Ci, C), jnp.float32),
        "bth":  0.2 * jax.random.normal(keys[4], (Ci,), jnp.float32),
        "wphi": 0.2 * jax.random.normal(keys[5], (Ci, C), jnp.float32),
        "bphi": 0.2 * jax.random.normal(keys[6], (Ci,), jnp.float32),
        # W projection (Ci -> C) + BatchNorm params
        "ww":   0.2 * jax.random.normal(keys[7], (C, Ci), jnp.float32),
        "wb":   0.2 * jax.random.normal(keys[8], (C,), jnp.float32),
        "gamma": 1.0 + 0.1 * jax.random.normal(keys[9], (C,), jnp.float32),
        "beta":  0.1 * jax.random.normal(keys[10], (C,), jnp.float32),
        "running_mean": jnp.zeros((C,), jnp.float32),
        "running_var": jnp.ones((C,), jnp.float32),
    }

    fwd = jax.jit(nonlocal_block_embedded_gaussian)
    z = jax.block_until_ready(fwd(x, params))

    z_ref = reference_forward(x, params)
    assert z.shape == x.shape, (z.shape, x.shape)
    # bf16 MXU operands vs. the f32 XLA reference -> allow ~1e-2.
    if jnp.allclose(z, z_ref, rtol=1e-2, atol=1e-2):
        print("KERNEL_OK")
    else:
        print("MISMATCH: max abs err =", float(jnp.max(jnp.abs(z - z_ref))))
</pallas_src>

<mosaic_0001>
module attributes {stable_mosaic.version = 11 : i64} {
  func.func @_gphi_kernel(%arg0: i32, %arg1: i32, %arg2: memref<4x4xbf16, #tpu.memory_space<vmem>>, %arg3: memref<4x1xf32, #tpu.memory_space<vmem>>, %arg4: memref<1x4x128xf32, #tpu.memory_space<vmem>>, %arg5: memref<1x4x128xbf16, #tpu.memory_space<vmem>>) attributes {dimension_semantics = [#tpu.dimension_semantics<parallel>, #tpu.dimension_semantics<parallel>], iteration_bounds = array<i64: 2, 2>, scalar_prefetch = 0 : i64, scratch_operands = 0 : i64, tpu.core_type = #tpu.core_type<tc>, window_params = [{pipeline_mode = #tpu.pipeline_mode<synchronous>, transform_indices = @transform_0, window_bounds = array<i64: 4, 4>}, {pipeline_mode = #tpu.pipeline_mode<synchronous>, transform_indices = @transform_1, window_bounds = array<i64: 4, 1>}, {transform_indices = @transform_2, window_bounds = array<i64: 1, 4, 128>}, {transform_indices = @transform_3, window_bounds = array<i64: 1, 4, 128>}]} {
    %c0 = arith.constant 0 : index
    %c0_0 = arith.constant 0 : index
    %0 = vector.load %arg2[%c0, %c0_0] : memref<4x4xbf16, #tpu.memory_space<vmem>>, vector<4x4xbf16>
    %c0_1 = arith.constant 0 : index
    %c0_2 = arith.constant 0 : index
    %c0_3 = arith.constant 0 : index
    %1 = vector.load %arg4[%c0_1, %c0_2, %c0_3] : memref<1x4x128xf32, #tpu.memory_space<vmem>>, vector<1x4x128xf32>
    %2 = vector.shape_cast %1 : vector<1x4x128xf32> to vector<4x128xf32>
    %3 = arith.truncf %2 : vector<4x128xf32> to vector<4x128xbf16>
    %cst = arith.constant dense<0.000000e+00> : vector<4x128xf32>
    %4 = tpu.matmul %0, %3, %cst {dimension_numbers = #tpu.dot_dimension_numbers<[1], [0], [0], [1], [0, 0, 1, 1], [], []>} : vector<4x4xbf16>, vector<4x128xbf16>, vector<4x128xf32> -> vector<4x128xf32>
    %c0_4 = arith.constant 0 : index
    %c0_5 = arith.constant 0 : index
    %5 = vector.load %arg3[%c0_4, %c0_5] : memref<4x1xf32, #tpu.memory_space<vmem>>, vector<4x1xf32>
    %6 = vector.broadcast %5 : vector<4x1xf32> to vector<4x128xf32>
    %7 = arith.addf %4, %6 : vector<4x128xf32>
    %8 = arith.truncf %7 : vector<4x128xf32> to vector<4x128xbf16>
    %c0_6 = arith.constant 0 : index
    %c0_7 = arith.constant 0 : index
    %c0_8 = arith.constant 0 : index
    %9 = vector.load %arg5[%c0_6, %c0_7, %c0_8] : memref<1x4x128xbf16, #tpu.memory_space<vmem>>, vector<1x4x128xbf16>
    %10 = vector.shape_cast %9 : vector<1x4x128xbf16> to vector<4x128xbf16>
    %11 = vector.shape_cast %8 : vector<4x128xbf16> to vector<1x4x128xbf16>
    tpu.vector_store %arg5[%c0_6, %c0_7, %c0_8], %11 {strides = array<i32>} : memref<1x4x128xbf16, #tpu.memory_space<vmem>>, vector<1x4x128xbf16>,
    return
  }
  func.func @transform_0(%arg0: i32, %arg1: i32) -> (i32, i32) {
    %c0_i32 = arith.constant 0 : i32
    %c0_i32_0 = arith.constant 0 : i32
    %c0_i32_1 = arith.constant 0 : i32
    return %c0_i32, %c0_i32_0 : i32, i32
  }
  func.func @transform_1(%arg0: i32, %arg1: i32) -> (i32, i32) {
    %c0_i32 = arith.constant 0 : i32
    %c0_i32_0 = arith.constant 0 : i32
    %c0_i32_1 = arith.constant 0 : i32
    return %c0_i32, %c0_i32_0 : i32, i32
  }
  func.func @transform_2(%arg0: i32, %arg1: i32) -> (i32, i32, i32) {
    %c0_i32 = arith.constant 0 : i32
    %c0_i32_0 = arith.constant 0 : i32
    return %arg0, %c0_i32, %arg1 : i32, i32, i32
  }
  func.func @transform_3(%arg0: i32, %arg1: i32) -> (i32, i32, i32) {
    %c0_i32 = arith.constant 0 : i32
    %c0_i32_0 = arith.constant 0 : i32
    return %arg0, %c0_i32, %arg1 : i32, i32, i32
  }
}

module attributes {stable_mosaic.version = 11 : i64} {
  func.func @_attn_kernel(%arg0: i32, %arg1: i32, %arg2: memref<1x4x128xf32, #tpu.memory_space<vmem>>, %arg3: memref<1x2x64xbf16, #tpu.memory_space<vmem>>, %arg4: memref<1x2x64xbf16, #tpu.memory_space<vmem>>, %arg5: memref<2x4xbf16, #tpu.memory_space<vmem>>, %arg6: memref<2x1xf32, #tpu.memory_space<vmem>>, %arg7: memref<4x2xbf16, #tpu.memory_space<vmem>>, %arg8: memref<4x1xf32, #tpu.memory_space<vmem>>, %arg9: memref<1x4x128xf32, #tpu.memory_space<vmem>>) attributes {dimension_semantics = [#tpu.dimension_semantics<parallel>, #tpu.dimension_semantics<parallel>], iteration_bounds = array<i64: 2, 2>, scalar_prefetch = 0 : i64, scratch_operands = 0 : i64, tpu.core_type = #tpu.core_type<tc>, window_params = [{transform_indices = @transform_0, window_bounds = array<i64: 1, 4, 128>}, {transform_indices = @transform_1, window_bounds = array<i64: 1, 2, 64>}, {transform_indices = @transform_2, window_bounds = array<i64: 1, 2, 64>}, {pipeline_mode = #tpu.pipeline_mode<synchronous>, transform_indices = @transform_3, window_bounds = array<i64: 2, 4>}, {pipeline_mode = #tpu.pipeline_mode<synchronous>, transform_indices = @transform_4, window_bounds = array<i64: 2, 1>}, {pipeline_mode = #tpu.pipeline_mode<synchronous>, transform_indices = @transform_5, window_bounds = array<i64: 4, 2>}, {pipeline_mode = #tpu.pipeline_mode<synchronous>, transform_indices = @transform_6, window_bounds = array<i64: 4, 1>}, {transform_indices = @transform_7, window_bounds = array<i64: 1, 4, 128>}]} {
    %c0 = arith.constant 0 : index
    %c0_0 = arith.constant 0 : index
    %c0_1 = arith.constant 0 : index
    %0 = vector.load %arg2[%c0, %c0_0, %c0_1] : memref<1x4x128xf32, #tpu.memory_space<vmem>>, vector<1x4x128xf32>
    %1 = vector.shape_cast %0 : vector<1x4x128xf32> to vector<4x128xf32>
    %2 = arith.truncf %1 : vector<4x128xf32> to vector<4x128xbf16>
    %c0_2 = arith.constant 0 : index
    %c0_3 = arith.constant 0 : index
    %3 = vector.load %arg5[%c0_2, %c0_3] : memref<2x4xbf16, #tpu.memory_space<vmem>>, vector<2x4xbf16>
    %cst = arith.constant dense<0.000000e+00> : vector<2x128xf32>
    %4 = tpu.matmul %3, %2, %cst {dimension_numbers = #tpu.dot_dimension_numbers<[1], [0], [0], [1], [0, 0, 1, 1], [], []>} : vector<2x4xbf16>, vector<4x128xbf16>, vector<2x128xf32> -> vector<2x128xf32>
    %c0_4 = arith.constant 0 : index
    %c0_5 = arith.constant 0 : index
    %5 = vector.load %arg6[%c0_4, %c0_5] : memref<2x1xf32, #tpu.memory_space<vmem>>, vector<2x1xf32>
    %6 = vector.broadcast %5 : vector<2x1xf32> to vector<2x128xf32>
    %7 = arith.addf %4, %6 : vector<2x128xf32>
    %c0_6 = arith.constant 0 : index
    %c0_7 = arith.constant 0 : index
    %c0_8 = arith.constant 0 : index
    %8 = vector.load %arg4[%c0_6, %c0_7, %c0_8] : memref<1x2x64xbf16, #tpu.memory_space<vmem>>, vector<1x2x64xbf16>
    %9 = vector.shape_cast %8 : vector<1x2x64xbf16> to vector<2x64xbf16>
    %10 = arith.truncf %7 : vector<2x128xf32> to vector<2x128xbf16>
    %cst_9 = arith.constant dense<0.000000e+00> : vector<64x128xf32>
    %11 = tpu.matmul %9, %10, %cst_9 {dimension_numbers = #tpu.dot_dimension_numbers<[0], [0], [1], [1], [0, 1, 1, 1], [], []>} : vector<2x64xbf16>, vector<2x128xbf16>, vector<64x128xf32> -> vector<64x128xf32>
    %cst_10 = arith.constant dense<0xFF800000> : vector<128xf32>
    %12 = vector.multi_reduction <maximumf>, %11, %cst_10 [0] : vector<64x128xf32> to vector<128xf32>
    %13 = vector.shape_cast %12 : vector<128xf32> to vector<1x128xf32>
    %14 = vector.broadcast %13 : vector<1x128xf32> to vector<64x128xf32>
    %15 = arith.subf %11, %14 : vector<64x128xf32>
    %16 = math.exp %15 : vector<64x128xf32>
    %cst_11 = arith.constant dense<0.000000e+00> : vector<128xf32>
    %17 = vector.multi_reduction <add>, %16, %cst_11 [0] : vector<64x128xf32> to vector<128xf32>
    %18 = vector.shape_cast %17 : vector<128xf32> to vector<1x128xf32>
    %c0_12 = arith.constant 0 : index
    %c0_13 = arith.constant 0 : index
    %c0_14 = arith.constant 0 : index
    %19 = vector.load %arg3[%c0_12, %c0_13, %c0_14] : memref<1x2x64xbf16, #tpu.memory_space<vmem>>, vector<1x2x64xbf16>
    %20 = vector.shape_cast %19 : vector<1x2x64xbf16> to vector<2x64xbf16>
    %21 = arith.truncf %16 : vector<64x128xf32> to vector<64x128xbf16>
    %cst_15 = arith.constant dense<0.000000e+00> : vector<2x128xf32>
    %22 = tpu.matmul %20, %21, %cst_15 {dimension_numbers = #tpu.dot_dimension_numbers<[1], [0], [0], [1], [0, 0, 1, 1], [], []>} : vector<2x64xbf16>, vector<64x128xbf16>, vector<2x128xf32> -> vector<2x128xf32>
    %23 = tpu.reciprocal %18 : vector<1x128xf32> -> vector<1x128xf32>
    %24 = vector.broadcast %23 : vector<1x128xf32> to vector<2x128xf32>
    %25 = arith.mulf %22, %24 : vector<2x128xf32>
    %c0_16 = arith.constant 0 : index
    %c0_17 = arith.constant 0 : index
    %26 = vector.load %arg7[%c0_16, %c0_17] : memref<4x2xbf16, #tpu.memory_space<vmem>>, vector<4x2xbf16>
    %27 = arith.truncf %25 : vector<2x128xf32> to vector<2x128xbf16>
    %cst_18 = arith.constant dense<0.000000e+00> : vector<4x128xf32>
    %28 = tpu.matmul %26, %27, %cst_18 {dimension_numbers = #tpu.dot_dimension_numbers<[1], [0], [0], [1], [0, 0, 1, 1], [], []>} : vector<4x2xbf16>, vector<2x128xbf16>, vector<4x128xf32> -> vector<4x128xf32>
    %c0_19 = arith.constant 0 : index
    %c0_20 = arith.constant 0 : index
    %29 = vector.load %arg8[%c0_19, %c0_20] : memref<4x1xf32, #tpu.memory_space<vmem>>, vector<4x1xf32>
    %30 = vector.broadcast %29 : vector<4x1xf32> to vector<4x128xf32>
    %31 = arith.addf %28, %30 : vector<4x128xf32>
    %32 = arith.addf %31, %1 : vector<4x128xf32>
    %c0_21 = arith.constant 0 : index
    %c0_22 = arith.constant 0 : index
    %c0_23 = arith.constant 0 : index
    %33 = vector.load %arg9[%c0_21, %c0_22, %c0_23] : memref<1x4x128xf32, #tpu.memory_space<vmem>>, vector<1x4x128xf32>
    %34 = vector.shape_cast %33 : vector<1x4x128xf32> to vector<4x128xf32>
    %35 = vector.shape_cast %32 : vector<4x128xf32> to vector<1x4x128xf32>
    tpu.vector_store %arg9[%c0_21, %c0_22, %c0_23], %35 {strides = array<i32>} : memref<1x4x128xf32, #tpu.memory_space<vmem>>, vector<1x4x128xf32>,
    return
  }
  func.func @transform_0(%arg0: i32, %arg1: i32) -> (i32, i32, i32) {
    %c0_i32 = arith.constant 0 : i32
    %c0_i32_0 = arith.constant 0 : i32
    return %arg0, %c0_i32, %arg1 : i32, i32, i32
  }
  func.func @transform_1(%arg0: i32, %arg1: i32) -> (i32, i32, i32) {
    %c0_i32 = arith.constant 0 : i32
    %c0_i32_0 = arith.constant 0 : i32
    %c0_i32_1 = arith.constant 0 : i32
    return %arg0, %c0_i32, %c0_i32_0 : i32, i32, i32
  }
  func.func @transform_2(%arg0: i32, %arg1: i32) -> (i32, i32, i32) {
    %c0_i32 = arith.constant 0 : i32
    %c0_i32_0 = arith.constant 0 : i32
    %c0_i32_1 = arith.constant 0 : i32
    return %arg0, %c0_i32, %c0_i32_0 : i32, i32, i32
  }
  func.func @transform_3(%arg0: i32, %arg1: i32) -> (i32, i32) {
    %c0_i32 = arith.constant 0 : i32
    %c0_i32_0 = arith.constant 0 : i32
    %c0_i32_1 = arith.constant 0 : i32
    return %c0_i32, %c0_i32_0 : i32, i32
  }
  func.func @transform_4(%arg0: i32, %arg1: i32) -> (i32, i32) {
    %c0_i32 = arith.constant 0 : i32
    %c0_i32_0 = arith.constant 0 : i32
    %c0_i32_1 = arith.constant 0 : i32
    return %c0_i32, %c0_i32_0 : i32, i32
  }
  func.func @transform_5(%arg0: i32, %arg1: i32) -> (i32, i32) {
    %c0_i32 = arith.constant 0 : i32
    %c0_i32_0 = arith.constant 0 : i32
    %c0_i32_1 = arith.constant 0 : i32
    return %c0_i32, %c0_i32_0 : i32, i32
  }
  func.func @transform_6(%arg0: i32, %arg1: i32) -> (i32, i32) {
    %c0_i32 = arith.constant 0 : i32
    %c0_i32_0 = arith.constant 0 : i32
    %c0_i32_1 = arith.constant 0 : i32
    return %c0_i32, %c0_i32_0 : i32, i32
  }
  func.func @transform_7(%arg0: i32, %arg1: i32) -> (i32, i32, i32) {
    %c0_i32 = arith.constant 0 : i32
    %c0_i32_0 = arith.constant 0 : i32
    return %arg0, %c0_i32, %arg1 : i32, i32, i32
  }
}

</mosaic_0001>

<bundles_post_ra>
// kernel: nonlocal_block_embedded_gaussian.2
= control target key start
LH: loop header
LB: loop body
LE: loop exit
PB: predicated region body
PF: predicated region fallthrough
CT: control target
= control target key end

     0   :  { %s475_s12 = smov 0   ;;  %s477_s13 = smov 0   ;;  %s532_s0 = inlined_call_operand.vmem [shape: bf16[4,4], index: 0, kind: input, shape index: {}]   ;;  %s533_s1 = inlined_call_operand.vmem [shape: f32[4,1], index: 1, kind: input, shape index: {}]   ;;  %s534_s2 = inlined_call_operand.vmem [shape: f32[2,4,256], index: 2, kind: input, shape index: {}]   ;;  %s535_s3 = inlined_call_operand.vmem [shape: bf16[2,4,256], index: 3, kind: output, shape index: {}]  }
   0x1   :  { %s479_s14 = smov 0   ;;  %s481_s15 = smov 0  }
   0x2   :  { %s483_s16 = smov 0  }
   0x3 LB: > { %s22_s17 = sadd.s32 1, %s442_s14  ;;  %s25_s18 = sadd.s32 1, %s446_s15  ;;  %s450_s16 = sphi %s483_s16, %s13_s16   ;;  %s446_s15 = sphi %s481_s15, %s539_s15   ;;  %s442_s14 = sphi %s479_s14, %s538_s14   ;;  %s438_s13 = sphi %s477_s13, %s537_s13   ;;  %s434_s12 = sphi %s475_s12, %s536_s12  }
   0x4   : > { %p23_p0 = scmp.ge.s32.totalorder %s22_s17, 2  ;;  %p352_p1 = scmp.ge.s32.totalorder %s450_s16, 1 }
   0x5   : > { %p156_p2 = scmp.lt.s32.totalorder %s450_s16, 5 }
   0x6   : > { %s541_s17 = smov (%p23_p0, %s22_s17), 0  ;;  %s543_s18 = smov (!%p23_p0, %s25_s18), %s446_s15 }
   0x7   : > { %p157_p3 = pnand %p352_p1, %p156_p2  ;;  %p27_p4 = scmp.ge.s32.totalorder %s543_s18, 2 }
   0x8   : > { %p186_p5 = scmp.lt.s32.totalorder (!%p157_p3), %s438_s13, 1  ;;  %p188_p6 = scmp.lt.s32.totalorder (!%p157_p3), %s434_s12, 1  ;;  %v452_v0 = vmov (!%p157_p3), 0.0   ;;  %vm453_vm0 = vmmov (!%p157_p3), 0   ;;  %v206_v1 = vld [vmem:[%s533_s1] sm:$0xf] (!%p157_p3) }
   0x9   : > { %s545_s18 = smov (%p27_p4, %s543_s18), 0  ;;  %160 = sbr.rel (%p157_p3) target bundleno = 245 (0xf5), region = 32 }
   0xa   : > { %362 = vmatprep.subr.bf16.mxu0 (!%p157_p3), %v452_v0  ;;  %364 = vmatprep.mubr.msk.bf16.mxu0 (!%p157_p3), %vm453_vm0, %v452_v0  ;;  %v454_v2 = vmov (!%p157_p3), 0   ;;  %vm216_vm1 = vcmask (!%p157_p3), 1041408   ;;  %v203_v6 = vld [vmem:[%s532_s0] sm:$0x3] (!%p157_p3)  ;;  %vm212_vm2 = vcmask (!%p157_p3), 31744  }
   0xb   : > { %411 = vset.pattern.permute.xlu0 (!%p157_p3), %v454_v2 }
   0xc   : > { %209 = vperm.xlu0 (!%p157_p3), %411, %v206_v1  }
  0x10   : > { %s547_s13 = smov (!%p186_p5, %s438_s13), 1  ;;  %s549_s12 = smov (!%p188_p6, %s434_s12), 1 }
  0x11   : > { %s353_s21 = sshll.u32 %s547_s13, 1 }
  0x12   : > { %s191_s22 = sadd.s32 %s353_s21, %s549_s12 }
  0x13   : > { %s354_s23 = sshll.u32 %s191_s22, 2  ;;  %s356_s29 = sshll.u32 %s191_s22, 1 }
  0x14   : > { %s193_s26 = scalar_lea.vmem %s534_s2, %s354_s23  ;;  %s201_s5 = scalar_lea.vmem %s535_s3, %s356_s29 }
  0x15   : > { %v204_v3 = vld [vmem:[%s193_s26] sm:$0xf] }
  0x16   : > { %v205_v4 = vpack.c.bf16 %v204_v3, %v204_v3 }
  0x18   : > { %v218_v5 = vsel %vm216_vm1, %v205_v4, 0 }
  0x19   : > { %363 = vmatpush3.bf16.msra.mxu0 %v218_v5 }
  0x1c   : > { %365 = vmatmul.mubr.msk.bf16.vlgmr.msra.gmra.mrb[0].mxu0 %vm212_vm2, %v203_v6 }
  0x8b   : > { %v210_v7 = vpop.permute.xlu0 %209 }
  0xef   : > { %v254_v8 = vpop.f32.mrb[0].mxu0 }
  0xf0   : > { %v255_v9 = vadd.f32 %v254_v8, %v210_v7  ;;  %v366_v10 = vpop.f32.mrb[1].mxu0 }
  0xf1   : > { %v257_v11 = vpop.f32.mrb[2].mxu0 }
  0xf2   : > { %v260_v12 = vpack.c.bf16 %v255_v9, %v255_v9  ;;  %v367_v13 = vpop.f32.mrb[3].mxu0 }
  0xf4   : > { %261 = vst [vmem:[%s201_s5] sm:$0x3] %v260_v12 }
  0xf5 PF: > { %s13_s16 = sadd.s32 1, %s450_s16   ;;  %s536_s12 = smov %s442_s14 }
  0xf6   : > { %p10_p7 = scmp.ge.s32.totalorder %s13_s16, 6   ;;  %s537_s13 = smov %s446_s15 }
  0xf7   : > { %s538_s14 = smov %s541_s17  ;;  %s539_s15 = smov %s545_s18 }
  0xf8   :  { %12 = sbr.rel (!%p10_p7) target bundleno = 3 (0x3), region = 62 }

// kernel: nonlocal_block_embedded_gaussian.3
= control target key start
LH: loop header
LB: loop body
LE: loop exit
PB: predicated region body
PF: predicated region fallthrough
CT: control target
= control target key end

     0   :  { %s970_s24 = smov 0   ;;  %s972_s25 = smov 0   ;;  %s1076_s0 = inlined_call_operand.vmem [shape: f32[2,4,256], index: 0, kind: input, shape index: {}, may-alias: {0,7}]   ;;  %s1077_s1 = inlined_call_operand.vmem [shape: bf16[2,2,64], index: 1, kind: input, shape index: {}]   ;;  %s1078_s2 = inlined_call_operand.vmem [shape: bf16[2,2,64], index: 2, kind: input, shape index: {}]   ;;  %s1079_s3 = inlined_call_operand.vmem [shape: bf16[2,4], index: 3, kind: input, shape index: {}]   ;;  %s1080_s4 = inlined_call_operand.vmem [shape: f32[2,1], index: 4, kind: input, shape index: {}]   ;;  %s1081_s5 = inlined_call_operand.vmem [shape: bf16[4,2], index: 5, kind: input, shape index: {}]   ;;  %s1082_s6 = inlined_call_operand.vmem [shape: f32[4,1], index: 6, kind: input, shape index: {}]   ;;  %s1083_s7 = inlined_call_operand.vmem [shape: f32[2,4,256], index: 7, kind: output, shape index: {}, may-alias: {0,7}]  }
   0x1   :  { %s974_s26 = smov 0   ;;  %s976_s27 = smov 0  }
   0x2   :  { %s978_s28 = smov 0  }
   0x3 LB: > { %s26_s29 = sadd.s32 1, %s917_s26  ;;  %s29_s30 = sadd.s32 1, %s921_s27  ;;  %s925_s28 = sphi %s978_s28, %s17_s28   ;;  %s921_s27 = sphi %s976_s27, %s1087_s27   ;;  %s917_s26 = sphi %s974_s26, %s1086_s26   ;;  %s913_s25 = sphi %s972_s25, %s1085_s25   ;;  %s909_s24 = sphi %s970_s24, %s1084_s24  }
   0x4   : > { %p27_p0 = scmp.ge.s32.totalorder %s26_s29, 2  ;;  %p761_p1 = scmp.ge.s32.totalorder %s925_s28, 1 }
   0x5   : > { %p272_p2 = scmp.lt.s32.totalorder %s925_s28, 5 }
   0x6   : > { %s1089_s29 = smov (%p27_p0, %s26_s29), 0  ;;  %s1091_s30 = smov (!%p27_p0, %s29_s30), %s921_s27 }
   0x7   : > { %p273_p3 = pnand %p761_p1, %p272_p2  ;;  %p31_p4 = scmp.ge.s32.totalorder %s1091_s30, 2 }
   0x8   : > { %p316_p5 = scmp.lt.s32.totalorder (!%p273_p3), %s913_s25, 1  ;;  %p318_p6 = scmp.lt.s32.totalorder (!%p273_p3), %s909_s24, 1  ;;  %v927_v0 = vmov (!%p273_p3), 0.0   ;;  %vm928_vm0 = vmmov (!%p273_p3), 0   ;;  %v342_v1 = vld [vmem:[%s1080_s4] sm:$0x3] (!%p273_p3) }
   0x9   : > { %s1093_s30 = smov (%p31_p4, %s1091_s30), 0  ;;  %276 = sbr.rel (%p273_p3) target bundleno = 959 (0x3bf), region = 48 }
   0xa   : > { %789 = vmatprep.subr.bf16.mxu0 (!%p273_p3), %v927_v0  ;;  %791 = vmatprep.mubr.msk.bf16.mxu0 (!%p273_p3), %vm928_vm0, %v927_v0  ;;  %v929_v2 = vmov (!%p273_p3), 0   ;;  %vm352_vm1 = vcmask (!%p273_p3), 1041408   ;;  %v341_v6 = vld [vmem:[%s1079_s3] sm:$0x1] (!%p273_p3)  ;;  %vm348_vm2 = vcmask (!%p273_p3), 31744   ;;  %vm414_vm3 = vcmask (!%p273_p3), 15360  }
   0xb   : > { %867 = vset.pattern.permute.xlu0 (!%p273_p3), %v929_v2  ;;  %868 = vset.pattern.permute.xlu1 (!%p273_p3), %v929_v2  ;;  %vm427_vm4 = vcmask (!%p273_p3), 1040384   ;;  %vm551_vm5 = vcmask (!%p273_p3), 523264  }
   0xc   : > { %345 = vperm.xlu0 (!%p273_p3), %867, %v342_v1  }
  0x10   : > { %s1095_s25 = smov (!%p316_p5, %s913_s25), 1  ;;  %s1097_s24 = smov (!%p318_p6, %s909_s24), 1 }
  0x11   : > { %s762_s10 = sshll.u32 %s1095_s25, 1  ;;  %s329_s20 = scalar_lea.vmem %s1078_s2, %s1095_s25 }
  0x12   : > { %s1009_s11 = sadd.s32 %s762_s10, %s1097_s24  ;;  %v396_v7 = vld [vmem:[%s329_s20] sm:$0x1]  ;;  %s326_s23 = scalar_lea.vmem %s1077_s1, %s1095_s25 }
  0x13   : > { %s763_s12 = sshll.u32 %s1009_s11, 2 }
  0x14   : > { %s323_s15 = scalar_lea.vmem %s1076_s0, %s763_s12  ;;  %s337_s14 = scalar_lea.vmem %s1083_s7, %s763_s12 }
  0x15   : > { %v1017_v3 = vld [vmem:[%s323_s15] sm:$0xf] }
  0x16   : > { %v340_v4 = vpack.c.bf16 %v1017_v3, %v1017_v3 }
  0x18   : > { %v354_v5 = vsel %vm352_vm1, %v340_v4, 0 }
  0x19   : > { %790 = vmatpush3.bf16.msra.mxu0 %v354_v5 }
  0x1a   : > { %805 = vmatprep.subr.bf16.mxu0 %v927_v0 }
  0x1c   : > { %792 = vmatmul.mubr.msk.bf16.vlgmr.msra.gmra.mrb[0].mxu0 %vm348_vm2, %v341_v6 }
  0x1d   : > { %813 = vmatprep.mubr.msk.bf16.mxu0 %vm928_vm0, %v927_v0 }
  0x2a   : > { %398 = vxpose.xlu0.c.b16.start.end [1/1] (short) (narrow) %v396_v7, 64 }
  0x8b   : > { %v346_v8 = vpop.permute.xlu0 %345 }
  0x90   : > { %v406_v9 = vpop.trf.xlu0 }
  0x91   : > { %797 = vmatprep.mubr.msk.bf16.mxu1 %vm414_vm3, %v406_v9 }
  0x94   : > { %v407_v13 = vpop.trf.xlu0 }
  0x98   : > { %v408_v18 = vpop.trf.xlu0 }
  0x9c   : > { %v409_v19 = vpop.trf.xlu0 }
  0xef   : > { %v390_v10 = vpop.f32.mrb[0].mxu0 }
  0xf0   : > { %v391_v11 = vadd.f32 %v390_v10, %v346_v8  ;;  %v793_v12 = vpop.f32.mrb[1].mxu0 }
  0xf1   : > { %v393_v14 = vpop.f32.mrb[2].mxu0 }
  0xf2   : > { %v397_v15 = vpack.c.bf16 %v391_v11, %v391_v11  ;;  %v794_v16 = vpop.f32.mrb[3].mxu0  ;;  %v546_v14 = vld [vmem:[%s326_s23] sm:$0x1] }
  0xf4   : > { %823 = vmatprep.subr.msk.bf16.mxu1 %vm427_vm4, %v397_v15  ;;  %v429_v17 = vsel %vm427_vm4, %v397_v15, 0  ;;  %v599_v15 = vld [vmem:[%s1082_s6] sm:$0xf] }
  0xf5   : > { %796 = vmatpush3.bf16.msra.mxu1 %v429_v17  ;;  %602 = vperm.xlu1 %868, %v599_v15  }
  0xf6   : > { %817 = vmatprep.subr.bf16.mxu1 %v927_v0 }
  0xf8   : > { %798 = vmatmul.mubr.msk.bf16.vlgmr.msra.gmra.mrb[0].mxu1 %vm414_vm3, %v407_v13 }
  0xf9   : > { %801 = vmatprep.mubr.msk.bf16.mxu1 %vm414_vm3, %v408_v18 }
 0x100   : > { %802 = vmatmul.mubr.msk.bf16.gmra.mrb[4].mxu1 %vm414_vm3, %v409_v19 }
 0x101   : > { %819 = vmatprep.mubr.msk.bf16.mxu1 %vm928_vm0, %v927_v0 }
 0x1cb   : > { %v799_v20 = vpop.f32.mrb[0].mxu1 }
 0x1cc   : > { %v465_v21 = vpop.f32.mrb[1].mxu1 }
 0x1cd   : > { %v800_v22 = vpop.f32.mrb[2].mxu1 }
 0x1ce   : > { %v468_v23 = vpop.f32.mrb[3].mxu1 }
 0x1d3   : > { %v803_v24 = vpop.f32.mrb[4].mxu1 }
 0x1d4   : > { %v498_v25 = vmax.f32 %v799_v20, %v803_v24  ;;  %v481_v26 = vpop.f32.mrb[5].mxu1 }
 0x1d5   : > { %v496_v27 = vmax.f32 %v465_v21, %v481_v26  ;;  %v804_v28 = vpop.f32.mrb[6].mxu1 }
 0x1d6   : > { %v499_v29 = vmax.f32 %v800_v22, %v804_v28  ;;  %v484_v30 = vpop.f32.mrb[7].mxu1 }
 0x1d7   : > { %v497_v31 = vmax.f32 %v468_v23, %v484_v30 }
 0x1d8   : > { %v501_v32 = vmax.f32 %v498_v25, %v499_v29  ;;  %v597_v29 = vld [vmem:[%s1081_s5] sm:$0x3] }
 0x1d9   : > { %v500_v33 = vmax.f32 %v496_v27, %v497_v31 }
 0x1db   : > { %v502_v34 = vmax.f32 %v500_v33, %v501_v32 }
 0x1dd   : > { %v503_v35 = vrot.slane %v502_v34, 4 }
 0x1df   : > { %v504_v36 = vmax.f32 %v502_v34, %v503_v35 }
 0x1e1   : > { %v505_v37 = vrot.slane %v504_v36, 2 }
 0x1e3   : > { %v506_v38 = vmax.f32 %v504_v36, %v505_v37 }
 0x1e5   : > { %v507_v39 = vrot.slane %v506_v38, 1 }
 0x1e7   : > { %v508_v40 = vmax.f32 %v506_v38, %v507_v39 }
 0x1e9   : > { %v509_v41 = vsub.f32 %v465_v21, %v508_v40  ;;  %v510_v42 = vsub.f32 %v468_v23, %v508_v40  ;;  %v511_v43 = vsub.f32 %v799_v20, %v508_v40  ;;  %v512_v44 = vsub.f32 %v800_v22, %v508_v40 }
 0x1ea   : > { %v513_v45 = vsub.f32 %v481_v26, %v508_v40  ;;  %v514_v46 = vsub.f32 %v484_v30, %v508_v40  ;;  %v515_v47 = vsub.f32 %v803_v24, %v508_v40  ;;  %v516_v48 = vsub.f32 %v804_v28, %v508_v40  ;;  %v603_v30 = vpop.permute.xlu1 %602 }
 0x1eb   : > { %v517_v49 = vmul.f32 1.442695, %v509_v41  ;;  %v519_v50 = vmul.f32 1.442695, %v510_v42  ;;  %v521_v51 = vmul.f32 1.442695, %v511_v43 }
 0x1ec   : > { %v523_v52 = vmul.f32 1.442695, %v512_v44  ;;  %v525_v53 = vmul.f32 1.442695, %v513_v45  ;;  %v527_v54 = vmul.f32 1.442695, %v514_v46 }
 0x1ed   : > { %869 = vpow2.f32 %v517_v49  ;;  %v529_v55 = vmul.f32 1.442695, %v515_v47  ;;  %v531_v56 = vmul.f32 1.442695, %v516_v48 }
 0x1ee   : > { %871 = vpow2.f32 %v519_v50 }
 0x1ef   : > { %873 = vpow2.f32 %v521_v51 }
 0x1f0   : > { %875 = vpow2.f32 %v523_v52 }
 0x1f1   : > { %877 = vpow2.f32 %v525_v53 }
 0x1f2   : > { %879 = vpow2.f32 %v527_v54 }
 0x1f3   : > { %881 = vpow2.f32 %v529_v55 }
 0x1f4   : > { %883 = vpow2.f32 %v531_v56 }
 0x1f7   : > { %v870_v57 = vpop.eup %869 }
 0x1f8   : > { %v872_v58 = vpop.eup %871 }
 0x1f9   : > { %v874_v59 = vpop.eup %873  ;;  %v533_v60 = vadd.f32 %v872_v58, %v870_v57  ;;  %v547_v61 = vpack.c.bf16 %v872_v58, %v870_v57 }
 0x1fa   : > { %v876_v62 = vpop.eup %875 }
 0x1fb   : > { %v878_v63 = vpop.eup %877  ;;  %v534_v1 = vadd.f32 %v874_v59, %v533_v60  ;;  %806 = vmatpush3.bf16.msra.mxu0 %v547_v61  ;;  %v548_v2 = vpack.c.bf16 %v876_v62, %v874_v59 }
 0x1fc   : > { %v880_v4 = vpop.eup %879  ;;  %807 = vmatprep.subr.bf16.mxu0 %v927_v0 }
 0x1fd   : > { %v882_v5 = vpop.eup %881  ;;  %v535_v6 = vadd.f32 %v876_v62, %v534_v1  ;;  %v549_v7 = vpack.c.bf16 %v880_v4, %v878_v63 }
 0x1fe   : > { %v884_v8 = vpop.eup %883 }
 0x1ff   : > { %v536_v9 = vadd.f32 %v878_v63, %v535_v6  ;;  %808 = vmatpush3.bf16.msra.mxu0 %v548_v2  ;;  %v550_v10 = vpack.c.bf16 %v884_v8, %v882_v5 }
 0x200   : > { %809 = vmatprep.subr.bf16.mxu0 %v927_v0 }
 0x201   : > { %v537_v11 = vadd.f32 %v880_v4, %v536_v9 }
 0x203   : > { %v538_v12 = vadd.f32 %v882_v5, %v537_v11  ;;  %810 = vmatpush3.bf16.msra.mxu0 %v549_v7 }
 0x204   : > { %811 = vmatprep.subr.bf16.mxu0 %v927_v0 }
 0x205   : > { %v539_v13 = vadd.f32 %v884_v8, %v538_v12 }
 0x207   : > { %812 = vmatpush3.bf16.msra.mxu0 %v550_v10  ;;  %v540_v16 = vrot.slane %v539_v13, 4 }
 0x209   : > { %v541_v17 = vadd.f32 %v540_v16, %v539_v13 }
 0x20a   : > { %814 = vmatmul.mubr.msk.bf16.vlgmr.msra.gmra.mrb[4].mxu0 %vm551_vm5, %v546_v14 }
 0x20b   : > { %v542_v18 = vrot.slane %v541_v17, 2 }
 0x20d   : > { %v543_v19 = vadd.f32 %v542_v18, %v541_v17 }
 0x20f   : > { %v544_v20 = vrot.slane %v543_v19, 1 }
 0x211   : > { %v545_v0 = vadd.f32 %v544_v20, %v543_v19 }
 0x213   : > { %885 = vrcp.f32 %v545_v0 }
 0x21d   : > { %v886_v21 = vpop.eup %885 }
 0x2dd   : > { %v589_v22 = vpop.f32.mrb[4].mxu0 }
 0x2de   : > { %v596_v23 = vmul.f32 %v886_v21, %v589_v22  ;;  %v815_v24 = vpop.f32.mrb[5].mxu0 }
 0x2df   : > { %v592_v25 = vpop.f32.mrb[6].mxu0 }
 0x2e0   : > { %v598_v26 = vpack.c.bf16 %v596_v23, %v596_v23  ;;  %v816_v27 = vpop.f32.mrb[7].mxu0 }
 0x2e2   : > { %v609_v28 = vsel %vm427_vm4, %v598_v26, 0 }
 0x2e3   : > { %818 = vmatpush3.bf16.msra.mxu1 %v609_v28 }
 0x2e6   : > { %820 = vmatmul.mubr.msk.bf16.vlgmr.msra.gmra.mrb[8].mxu1 %vm414_vm3, %v597_v29 }
 0x3b9   : > { %v645_v31 = vpop.f32.mrb[8].mxu1 }
 0x3ba   : > { %v821_v32 = vpop.f32.mrb[9].mxu1  ;;  %v646_v33 = vadd.f32 %v645_v31, %v603_v30 }
 0x3bb   : > { %v648_v34 = vpop.f32.mrb[10].mxu1 }
 0x3bc   : > { %v651_v35 = vadd.f32 %v646_v33, %v1017_v3  ;;  %v822_v36 = vpop.f32.mrb[11].mxu1 }
 0x3be   : > { %652 = vst [vmem:[%s337_s14] sm:$0xf] %v651_v35 }
 0x3bf PF: > { %s17_s28 = sadd.s32 1, %s925_s28   ;;  %s1084_s24 = smov %s917_s26 }
 0x3c0   : > { %p14_p7 = scmp.ge.s32.totalorder %s17_s28, 6   ;;  %s1085_s25 = smov %s921_s27 }
 0x3c1   : > { %s1086_s26 = smov %s1089_s29  ;;  %s1087_s27 = smov %s1093_s30 }
 0x3c2   :  { %16 = sbr.rel (!%p14_p7) target bundleno = 3 (0x3), region = 84 }

</bundles_post_ra>
